<compile_context>
chip_gen: v5e
topology: v5e:2x2
jax: 0.10.0
libtpu: 0.0.40
codegen_flags: <defaults>
</compile_context>

<pallas_src>
import functools

import jax
import jax.numpy as jnp
from jax import lax
from jax.experimental import pallas as pl
from jax.experimental.pallas import tpu as pltpu

IMAGE_SHAPE = (28, 28)
BN_EPS = 0.8          # nn.BatchNorm1d(layer, 0.8) -> eps = 0.8
LRELU_SLOPE = 0.2
N_CHUNK = 128         # lane-width tile for the final layer


def _generator_kernel(z_ref,
                      w1_ref, gb1_ref,
                      w2_ref, gb2_ref,
                      w3_ref, b3_ref,
                      out_ref,
                      *, g_block, batch):
    """One grid step = g_block independent generator forwards (M = g_block*batch)."""
    m = g_block * batch
    inv_b = 1.0 / batch                     # static

    def linear_bn_lrelu(x_bf16, w_ref, gb_ref):
        # Native bf16 x bf16 MXU matmul, f32 accumulation.
        h = jnp.dot(x_bf16, w_ref[...], preferred_element_type=jnp.float32)  # (m, n)
        n = h.shape[1]
        # Per-group BatchNorm statistics: (g_block, B, n), reduce over B.
        # Linear bias omitted: cancelled exactly by the batch-mean subtraction.
        hg = h.reshape(g_block, batch, n)
        mean = jnp.sum(hg, axis=1, keepdims=True) * inv_b            # (g_block, 1, n)
        mean_sq = jnp.sum(hg * hg, axis=1, keepdims=True) * inv_b
        # One-pass var = E[h^2] - mean^2 can go slightly negative in f32;
        # clamp so a future eps change can't turn rsqrt into NaN (eps=0.8
        # dominates here anyway).
        var = jnp.maximum(mean_sq - mean * mean, 0.0)
        gamma = gb_ref[0:1, :]                                       # (1, n) broadcast
        beta = gb_ref[1:2, :]
        scale = gamma * lax.rsqrt(var + BN_EPS)                      # EUP rsqrt
        shift = beta - mean * scale
        hg = hg * scale + shift
        hg = jnp.where(hg >= 0, hg, LRELU_SLOPE * hg)                # LeakyReLU(0.2)
        return hg.reshape(m, n).astype(jnp.bfloat16)

    x = z_ref[...].astype(jnp.bfloat16)
    h = linear_bn_lrelu(x, w1_ref, gb1_ref)
    h = linear_bn_lrelu(h, w2_ref, gb2_ref)

    # Final Linear (padded to lane-dense width) + Tanh, N-tiled in 128-lane
    # chunks to keep the f32 accumulator / tanh / store pipeline small.
    n_chunks = w3_ref.shape[1] // N_CHUNK

    def tail_chunk(c, carry):
        off = pl.multiple_of(c * N_CHUNK, N_CHUNK)
        w3c = w3_ref[:, pl.ds(off, N_CHUNK)]                         # bf16 (K, 128)
        b3c = b3_ref[:, pl.ds(off, N_CHUNK)]                         # f32  (1, 128)
        o = jnp.dot(h, w3c, preferred_element_type=jnp.float32) + b3c
        out_ref[:, pl.ds(off, N_CHUNK)] = jnp.tanh(o)
        return carry

    lax.fori_loop(0, n_chunks, tail_chunk, 0, unroll=True)


def _choose_g_block(G, target=32):
    """Largest divisor of G that is <= target, preferring >= 2 grid steps (v7x)."""
    divisors = [d for d in range(1, G + 1) if G % d == 0 and d <= target]
    multi = [d for d in divisors if G // d >= 2]
    return max(multi) if multi else max(divisors)


def generator_forward(z, prepared_params, *, g_block=None, return_padded=False):
    """z: (B, input_size) or (G, B, input_size) float32; B should be a multiple of 8.

    Returns (B, 1, 28, 28) or (G, B, 1, 28, 28). Each group along G is one
    independent forward pass (its own BatchNorm batch statistics); G_BLOCK
    groups are fused into each grid step with VMEM-resident weights.
    With return_padded=True the raw (G, B, 896) lane-padded buffer is returned
    (skips the extra depad/reshape HBM pass).
    """
    squeeze_group = (z.ndim == 2)
    if squeeze_group:
        z = z[None]
    z = z.astype(jnp.float32)
    G, B, D = z.shape

    w1, gb1, w2, gb2, w3p, b3p = prepared_params
    out_pad = w3p.shape[1]
    out_size = IMAGE_SHAPE[0] * IMAGE_SHAPE[1]

    if g_block is None:
        g_block = _choose_g_block(G)
    assert G % g_block == 0, (G, g_block)
    grid_g = G // g_block
    m = g_block * B

    z_flat = z.reshape(G * B, D)
    kernel = functools.partial(_generator_kernel, g_block=g_block, batch=B)

    const2 = lambda g: (0, 0)   # weights: same block every grid step -> DMA'd once

    out = pl.pallas_call(
        kernel,
        out_shape=jax.ShapeDtypeStruct((G * B, out_pad), jnp.float32),
        grid=(grid_g,),
        in_specs=[
            pl.BlockSpec((m, D), lambda g: (g, 0)),
            pl.BlockSpec(w1.shape, const2),
            pl.BlockSpec(gb1.shape, const2),
            pl.BlockSpec(w2.shape, const2),
            pl.BlockSpec(gb2.shape, const2),
            pl.BlockSpec(w3p.shape, const2),
            pl.BlockSpec(b3p.shape, const2),
        ],
        out_specs=pl.BlockSpec((m, out_pad), lambda g: (g, 0)),
        compiler_params=pltpu.CompilerParams(
            dimension_semantics=("parallel",)),
    )(z_flat, w1, gb1, w2, gb2, w3p, b3p)

    if return_padded:
        out = out.reshape(G, B, out_pad)
        return out[0] if squeeze_group else out

    out = out[:, :out_size].reshape(G, B, 1, *IMAGE_SHAPE)
    if squeeze_group:
        out = out[0]
    return out


def init_params(key, input_size, hidden_layers, output_size):
    """Deterministic synthetic parameters, PyTorch-module-like layout (f32)."""
    params = []
    layer_size = input_size
    for layer in hidden_layers:
        kw, kb, key = jax.random.split(key, 3)
        bound = 1.0 / jnp.sqrt(layer_size)
        w = jax.random.uniform(kw, (layer_size, layer), jnp.float32, -bound, bound)
        b = jax.random.uniform(kb, (1, layer), jnp.float32, -bound, bound)
        gamma = jnp.ones((1, layer), jnp.float32)
        beta = jnp.zeros((1, layer), jnp.float32)
        params += [w, b, gamma, beta]
        layer_size = layer
    kw, kb, key = jax.random.split(key, 3)
    bound = 1.0 / jnp.sqrt(layer_size)
    w = jax.random.uniform(kw, (layer_size, output_size), jnp.float32, -bound, bound)
    b = jax.random.uniform(kb, (1, output_size), jnp.float32, -bound, bound)
    params += [w, b]
    return params


def prepare_params(params):
    """Pack / quantize / pad the PyTorch-like params for the kernel.

    - drops b1/b2 (exactly cancelled by BN batch-mean subtraction)
    - packs (gamma, beta) into one (2, N) operand per hidden layer
    - pads the final layer 784 -> 896 for lane-dense stores
    - stores the weight matrices in bf16 (dots run native bf16 with f32 accum)
    """
    (w1, b1, g1, be1, w2, b2, g2, be2, w3, b3) = params
    del b1, b2
    gb1 = jnp.concatenate([g1, be1], axis=0)              # (2, H1)
    gb2 = jnp.concatenate([g2, be2], axis=0)              # (2, H2)
    out_size = w3.shape[1]
    out_pad = 128 * pl.cdiv(out_size, 128)                # 784 -> 896
    w3p = jnp.pad(w3, ((0, 0), (0, out_pad - out_size)))
    b3p = jnp.pad(b3, ((0, 0), (0, out_pad - out_size)))
    return (w1.astype(jnp.bfloat16), gb1,
            w2.astype(jnp.bfloat16), gb2,
            w3p.astype(jnp.bfloat16), b3p)


def generator_ref(z, params):
    """Pure-JAX reference with full PyTorch semantics (incl. the b1/b2 biases).

    Matmul inputs are rounded to bf16 exactly as the kernel rounds them
    (bf16 weights, bf16-cast activations, f32 accumulation), so the comparison
    isolates the kernel structure: the BN fold and bias drop are exact.
    """
    (w1, b1, g1, be1, w2, b2, g2, be2, w3, b3) = params

    def mm(x, w):
        return jnp.dot(x.astype(jnp.bfloat16), w.astype(jnp.bfloat16),
                       preferred_element_type=jnp.float32)

    def block(x, w, b, g, be):
        h = mm(x, w) + b
        mean = jnp.mean(h, axis=0, keepdims=True)
        var = jnp.mean((h - mean) ** 2, axis=0, keepdims=True)
        h = (h - mean) / jnp.sqrt(var + BN_EPS) * g + be
        return jnp.where(h >= 0, h, LRELU_SLOPE * h)

    h = block(z, w1, b1, g1, be1)
    h = block(h, w2, b2, g2, be2)
    out = jnp.tanh(mm(h, w3) + b3)
    return out.reshape(z.shape[0], 1, *IMAGE_SHAPE)


if __name__ == "__main__":
    key = jax.random.PRNGKey(0)
    kz, kzg, kp = jax.random.split(key, 3)

    batch = 8
    input_size = 32
    hidden_layers = (64, 128)
    output_size = IMAGE_SHAPE[0] * IMAGE_SHAPE[1]   # 784

    params = init_params(kp, input_size, hidden_layers, output_size)
    prepared = prepare_params(params)

    # Single forward pass (matches one PyTorch Generator.forward call).
    z = jax.random.normal(kz, (batch, input_size), jnp.float32)
    out = jax.block_until_ready(generator_forward(z, prepared))
    ref = generator_ref(z, params)
    assert out.shape == (batch, 1, *IMAGE_SHAPE), out.shape
    assert jnp.allclose(out, ref, atol=2e-2, rtol=2e-2), "mismatch vs reference"

    # Batched sampling path: G independent forward passes, G_BLOCK=32 groups
    # fused per grid step (M=256 matmul rows), grid of 2 parallel steps.
    G = 64
    zs = jax.random.normal(kzg, (G, batch, input_size), jnp.float32)
    outs = jax.block_until_ready(generator_forward(zs, prepared))
    refs = jax.vmap(lambda zz: generator_ref(zz, params))(zs)
    assert outs.shape == (G, batch, 1, *IMAGE_SHAPE), outs.shape
    assert jnp.allclose(outs, refs, atol=2e-2, rtol=2e-2), "mismatch (batched)"

    print("KERNEL_OK")
</pallas_src>

<mosaic_0001>
module attributes {stable_mosaic.version = 11 : i64} {
  func.func @_generator_kernel(%arg0: i32, %arg1: memref<8x32xf32, #tpu.memory_space<vmem>>, %arg2: memref<32x64xbf16, #tpu.memory_space<vmem>>, %arg3: memref<2x64xf32, #tpu.memory_space<vmem>>, %arg4: memref<64x128xbf16, #tpu.memory_space<vmem>>, %arg5: memref<2x128xf32, #tpu.memory_space<vmem>>, %arg6: memref<128x896xbf16, #tpu.memory_space<vmem>>, %arg7: memref<1x896xf32, #tpu.memory_space<vmem>>, %arg8: memref<8x896xf32, #tpu.memory_space<vmem>>) attributes {dimension_semantics = [#tpu.dimension_semantics<parallel>], iteration_bounds = array<i64: 1>, scalar_prefetch = 0 : i64, scratch_operands = 0 : i64, tpu.core_type = #tpu.core_type<tc>, window_params = [{transform_indices = @transform_0, window_bounds = array<i64: 8, 32>}, {pipeline_mode = #tpu.pipeline_mode<synchronous>, transform_indices = @transform_1, window_bounds = array<i64: 32, 64>}, {pipeline_mode = #tpu.pipeline_mode<synchronous>, transform_indices = @transform_2, window_bounds = array<i64: 2, 64>}, {pipeline_mode = #tpu.pipeline_mode<synchronous>, transform_indices = @transform_3, window_bounds = array<i64: 64, 128>}, {pipeline_mode = #tpu.pipeline_mode<synchronous>, transform_indices = @transform_4, window_bounds = array<i64: 2, 128>}, {pipeline_mode = #tpu.pipeline_mode<synchronous>, transform_indices = @transform_5, window_bounds = array<i64: 128, 896>}, {pipeline_mode = #tpu.pipeline_mode<synchronous>, transform_indices = @transform_6, window_bounds = array<i64: 1, 896>}, {transform_indices = @transform_7, window_bounds = array<i64: 8, 896>}]} {
    %c0 = arith.constant 0 : index
    %c0_0 = arith.constant 0 : index
    %0 = vector.load %arg1[%c0, %c0_0] : memref<8x32xf32, #tpu.memory_space<vmem>>, vector<8x32xf32>
    %1 = arith.truncf %0 : vector<8x32xf32> to vector<8x32xbf16>
    %c0_1 = arith.constant 0 : index
    %c0_2 = arith.constant 0 : index
    %2 = vector.load %arg2[%c0_1, %c0_2] : memref<32x64xbf16, #tpu.memory_space<vmem>>, vector<32x64xbf16>
    %cst = arith.constant dense<0.000000e+00> : vector<8x64xf32>
    %3 = tpu.matmul %1, %2, %cst {dimension_numbers = #tpu.dot_dimension_numbers<[1], [0], [0], [1], [0, 0, 1, 1], [], []>} : vector<8x32xbf16>, vector<32x64xbf16>, vector<8x64xf32> -> vector<8x64xf32>
    %4 = vector.shape_cast %3 : vector<8x64xf32> to vector<1x8x64xf32>
    %cst_3 = arith.constant dense<0.000000e+00> : vector<1x64xf32>
    %5 = vector.multi_reduction <add>, %4, %cst_3 [1] : vector<1x8x64xf32> to vector<1x64xf32>
    %6 = vector.shape_cast %5 : vector<1x64xf32> to vector<1x1x64xf32>
    %cst_4 = arith.constant 1.250000e-01 : f32
    %7 = vector.broadcast %cst_4 : f32 to vector<1x1x64xf32>
    %8 = arith.mulf %6, %7 : vector<1x1x64xf32>
    %9 = arith.mulf %4, %4 : vector<1x8x64xf32>
    %cst_5 = arith.constant dense<0.000000e+00> : vector<1x64xf32>
    %10 = vector.multi_reduction <add>, %9, %cst_5 [1] : vector<1x8x64xf32> to vector<1x64xf32>
    %11 = vector.shape_cast %10 : vector<1x64xf32> to vector<1x1x64xf32>
    %cst_6 = arith.constant 1.250000e-01 : f32
    %12 = vector.broadcast %cst_6 : f32 to vector<1x1x64xf32>
    %13 = arith.mulf %11, %12 : vector<1x1x64xf32>
    %14 = arith.mulf %8, %8 : vector<1x1x64xf32>
    %15 = arith.subf %13, %14 : vector<1x1x64xf32>
    %cst_7 = arith.constant 0.000000e+00 : f32
    %16 = vector.broadcast %cst_7 : f32 to vector<1x1x64xf32>
    %17 = arith.maximumf %15, %16 : vector<1x1x64xf32>
    %c0_8 = arith.constant 0 : index
    %c0_9 = arith.constant 0 : index
    %18 = vector.load %arg3[%c0_8, %c0_9] : memref<2x64xf32, #tpu.memory_space<vmem>>, vector<1x64xf32>
    %c1 = arith.constant 1 : index
    %c0_10 = arith.constant 0 : index
    %19 = vector.load %arg3[%c1, %c0_10] : memref<2x64xf32, #tpu.memory_space<vmem>>, vector<1x64xf32>
    %cst_11 = arith.constant 8.000000e-01 : f32
    %20 = vector.broadcast %cst_11 : f32 to vector<1x1x64xf32>
    %21 = arith.addf %17, %20 : vector<1x1x64xf32>
    %22 = math.rsqrt %21 : vector<1x1x64xf32>
    %23 = vector.shape_cast %18 : vector<1x64xf32> to vector<1x1x64xf32>
    %24 = arith.mulf %23, %22 : vector<1x1x64xf32>
    %25 = arith.mulf %8, %24 : vector<1x1x64xf32>
    %26 = vector.shape_cast %19 : vector<1x64xf32> to vector<1x1x64xf32>
    %27 = arith.subf %26, %25 : vector<1x1x64xf32>
    %28 = vector.broadcast %24 : vector<1x1x64xf32> to vector<1x8x64xf32>
    %29 = arith.mulf %4, %28 : vector<1x8x64xf32>
    %30 = vector.broadcast %27 : vector<1x1x64xf32> to vector<1x8x64xf32>
    %31 = arith.addf %29, %30 : vector<1x8x64xf32>
    %cst_12 = arith.constant 0.000000e+00 : f32
    %32 = vector.broadcast %cst_12 : f32 to vector<1x8x64xf32>
    %33 = arith.cmpf oge, %31, %32 : vector<1x8x64xf32>
    %cst_13 = arith.constant 2.000000e-01 : f32
    %34 = vector.broadcast %cst_13 : f32 to vector<1x8x64xf32>
    %35 = arith.mulf %34, %31 : vector<1x8x64xf32>
    %36 = arith.select %33, %31, %35 : vector<1x8x64xi1>, vector<1x8x64xf32>
    %37 = vector.shape_cast %36 : vector<1x8x64xf32> to vector<8x64xf32>
    %38 = arith.truncf %37 : vector<8x64xf32> to vector<8x64xbf16>
    %c0_14 = arith.constant 0 : index
    %c0_15 = arith.constant 0 : index
    %39 = vector.load %arg4[%c0_14, %c0_15] : memref<64x128xbf16, #tpu.memory_space<vmem>>, vector<64x128xbf16>
    %cst_16 = arith.constant dense<0.000000e+00> : vector<8x128xf32>
    %40 = tpu.matmul %38, %39, %cst_16 {dimension_numbers = #tpu.dot_dimension_numbers<[1], [0], [0], [1], [0, 0, 1, 1], [], []>} : vector<8x64xbf16>, vector<64x128xbf16>, vector<8x128xf32> -> vector<8x128xf32>
    %41 = vector.shape_cast %40 : vector<8x128xf32> to vector<1x8x128xf32>
    %cst_17 = arith.constant dense<0.000000e+00> : vector<1x128xf32>
    %42 = vector.multi_reduction <add>, %41, %cst_17 [1] : vector<1x8x128xf32> to vector<1x128xf32>
    %43 = vector.shape_cast %42 : vector<1x128xf32> to vector<1x1x128xf32>
    %cst_18 = arith.constant 1.250000e-01 : f32
    %44 = vector.broadcast %cst_18 : f32 to vector<1x1x128xf32>
    %45 = arith.mulf %43, %44 : vector<1x1x128xf32>
    %46 = arith.mulf %41, %41 : vector<1x8x128xf32>
    %cst_19 = arith.constant dense<0.000000e+00> : vector<1x128xf32>
    %47 = vector.multi_reduction <add>, %46, %cst_19 [1] : vector<1x8x128xf32> to vector<1x128xf32>
    %48 = vector.shape_cast %47 : vector<1x128xf32> to vector<1x1x128xf32>
    %cst_20 = arith.constant 1.250000e-01 : f32
    %49 = vector.broadcast %cst_20 : f32 to vector<1x1x128xf32>
    %50 = arith.mulf %48, %49 : vector<1x1x128xf32>
    %51 = arith.mulf %45, %45 : vector<1x1x128xf32>
    %52 = arith.subf %50, %51 : vector<1x1x128xf32>
    %cst_21 = arith.constant 0.000000e+00 : f32
    %53 = vector.broadcast %cst_21 : f32 to vector<1x1x128xf32>
    %54 = arith.maximumf %52, %53 : vector<1x1x128xf32>
    %c0_22 = arith.constant 0 : index
    %c0_23 = arith.constant 0 : index
    %55 = vector.load %arg5[%c0_22, %c0_23] : memref<2x128xf32, #tpu.memory_space<vmem>>, vector<1x128xf32>
    %c1_24 = arith.constant 1 : index
    %c0_25 = arith.constant 0 : index
    %56 = vector.load %arg5[%c1_24, %c0_25] : memref<2x128xf32, #tpu.memory_space<vmem>>, vector<1x128xf32>
    %cst_26 = arith.constant 8.000000e-01 : f32
    %57 = vector.broadcast %cst_26 : f32 to vector<1x1x128xf32>
    %58 = arith.addf %54, %57 : vector<1x1x128xf32>
    %59 = math.rsqrt %58 : vector<1x1x128xf32>
    %60 = vector.shape_cast %55 : vector<1x128xf32> to vector<1x1x128xf32>
    %61 = arith.mulf %60, %59 : vector<1x1x128xf32>
    %62 = arith.mulf %45, %61 : vector<1x1x128xf32>
    %63 = vector.shape_cast %56 : vector<1x128xf32> to vector<1x1x128xf32>
    %64 = arith.subf %63, %62 : vector<1x1x128xf32>
    %65 = vector.broadcast %61 : vector<1x1x128xf32> to vector<1x8x128xf32>
    %66 = arith.mulf %41, %65 : vector<1x8x128xf32>
    %67 = vector.broadcast %64 : vector<1x1x128xf32> to vector<1x8x128xf32>
    %68 = arith.addf %66, %67 : vector<1x8x128xf32>
    %cst_27 = arith.constant 0.000000e+00 : f32
    %69 = vector.broadcast %cst_27 : f32 to vector<1x8x128xf32>
    %70 = arith.cmpf oge, %68, %69 : vector<1x8x128xf32>
    %cst_28 = arith.constant 2.000000e-01 : f32
    %71 = vector.broadcast %cst_28 : f32 to vector<1x8x128xf32>
    %72 = arith.mulf %71, %68 : vector<1x8x128xf32>
    %73 = arith.select %70, %68, %72 : vector<1x8x128xi1>, vector<1x8x128xf32>
    %74 = vector.shape_cast %73 : vector<1x8x128xf32> to vector<8x128xf32>
    %75 = arith.truncf %74 : vector<8x128xf32> to vector<8x128xbf16>
    %c0_i32 = arith.constant 0 : i32
    %c128_i32 = arith.constant 128 : i32
    %76 = arith.muli %c0_i32, %c128_i32 : i32
    %77 = tpu.assume_multiple %76, 128 : i32
    %c0_29 = arith.constant 0 : index
    %78 = arith.index_cast %77 : i32 to index
    %79 = vector.load %arg6[%c0_29, %78] : memref<128x896xbf16, #tpu.memory_space<vmem>>, vector<128x128xbf16>
    %c0_30 = arith.constant 0 : index
    %80 = arith.index_cast %77 : i32 to index
    %81 = vector.load %arg7[%c0_30, %80] : memref<1x896xf32, #tpu.memory_space<vmem>>, vector<1x128xf32>
    %cst_31 = arith.constant dense<0.000000e+00> : vector<8x128xf32>
    %82 = tpu.matmul %75, %79, %cst_31 {dimension_numbers = #tpu.dot_dimension_numbers<[1], [0], [0], [1], [0, 0, 1, 1], [], []>} : vector<8x128xbf16>, vector<128x128xbf16>, vector<8x128xf32> -> vector<8x128xf32>
    %83 = vector.broadcast %81 : vector<1x128xf32> to vector<8x128xf32>
    %84 = arith.addf %82, %83 : vector<8x128xf32>
    %85 = math.tanh %84 : vector<8x128xf32>
    %c0_32 = arith.constant 0 : index
    %86 = arith.index_cast %77 : i32 to index
    %87 = vector.load %arg8[%c0_32, %86] : memref<8x896xf32, #tpu.memory_space<vmem>>, vector<8x128xf32>
    tpu.vector_store %arg8[%c0_32, %86], %85 {strides = array<i32>} : memref<8x896xf32, #tpu.memory_space<vmem>>, vector<8x128xf32>,
    %c1_i32 = arith.constant 1 : i32
    %c128_i32_33 = arith.constant 128 : i32
    %88 = arith.muli %c1_i32, %c128_i32_33 : i32
    %89 = tpu.assume_multiple %88, 128 : i32
    %c0_34 = arith.constant 0 : index
    %90 = arith.index_cast %89 : i32 to index
    %91 = vector.load %arg6[%c0_34, %90] : memref<128x896xbf16, #tpu.memory_space<vmem>>, vector<128x128xbf16>
    %c0_35 = arith.constant 0 : index
    %92 = arith.index_cast %89 : i32 to index
    %93 = vector.load %arg7[%c0_35, %92] : memref<1x896xf32, #tpu.memory_space<vmem>>, vector<1x128xf32>
    %cst_36 = arith.constant dense<0.000000e+00> : vector<8x128xf32>
    %94 = tpu.matmul %75, %91, %cst_36 {dimension_numbers = #tpu.dot_dimension_numbers<[1], [0], [0], [1], [0, 0, 1, 1], [], []>} : vector<8x128xbf16>, vector<128x128xbf16>, vector<8x128xf32> -> vector<8x128xf32>
    %95 = vector.broadcast %93 : vector<1x128xf32> to vector<8x128xf32>
    %96 = arith.addf %94, %95 : vector<8x128xf32>
    %97 = math.tanh %96 : vector<8x128xf32>
    %c0_37 = arith.constant 0 : index
    %98 = arith.index_cast %89 : i32 to index
    %99 = vector.load %arg8[%c0_37, %98] : memref<8x896xf32, #tpu.memory_space<vmem>>, vector<8x128xf32>
    tpu.vector_store %arg8[%c0_37, %98], %97 {strides = array<i32>} : memref<8x896xf32, #tpu.memory_space<vmem>>, vector<8x128xf32>,
    %c2_i32 = arith.constant 2 : i32
    %c128_i32_38 = arith.constant 128 : i32
    %100 = arith.muli %c2_i32, %c128_i32_38 : i32
    %101 = tpu.assume_multiple %100, 128 : i32
    %c0_39 = arith.constant 0 : index
    %102 = arith.index_cast %101 : i32 to index
    %103 = vector.load %arg6[%c0_39, %102] : memref<128x896xbf16, #tpu.memory_space<vmem>>, vector<128x128xbf16>
    %c0_40 = arith.constant 0 : index
    %104 = arith.index_cast %101 : i32 to index
    %105 = vector.load %arg7[%c0_40, %104] : memref<1x896xf32, #tpu.memory_space<vmem>>, vector<1x128xf32>
    %cst_41 = arith.constant dense<0.000000e+00> : vector<8x128xf32>
    %106 = tpu.matmul %75, %103, %cst_41 {dimension_numbers = #tpu.dot_dimension_numbers<[1], [0], [0], [1], [0, 0, 1, 1], [], []>} : vector<8x128xbf16>, vector<128x128xbf16>, vector<8x128xf32> -> vector<8x128xf32>
    %107 = vector.broadcast %105 : vector<1x128xf32> to vector<8x128xf32>
    %108 = arith.addf %106, %107 : vector<8x128xf32>
    %109 = math.tanh %108 : vector<8x128xf32>
    %c0_42 = arith.constant 0 : index
    %110 = arith.index_cast %101 : i32 to index
    %111 = vector.load %arg8[%c0_42, %110] : memref<8x896xf32, #tpu.memory_space<vmem>>, vector<8x128xf32>
    tpu.vector_store %arg8[%c0_42, %110], %109 {strides = array<i32>} : memref<8x896xf32, #tpu.memory_space<vmem>>, vector<8x128xf32>,
    %c3_i32 = arith.constant 3 : i32
    %c128_i32_43 = arith.constant 128 : i32
    %112 = arith.muli %c3_i32, %c128_i32_43 : i32
    %113 = tpu.assume_multiple %112, 128 : i32
    %c0_44 = arith.constant 0 : index
    %114 = arith.index_cast %113 : i32 to index
    %115 = vector.load %arg6[%c0_44, %114] : memref<128x896xbf16, #tpu.memory_space<vmem>>, vector<128x128xbf16>
    %c0_45 = arith.constant 0 : index
    %116 = arith.index_cast %113 : i32 to index
    %117 = vector.load %arg7[%c0_45, %116] : memref<1x896xf32, #tpu.memory_space<vmem>>, vector<1x128xf32>
    %cst_46 = arith.constant dense<0.000000e+00> : vector<8x128xf32>
    %118 = tpu.matmul %75, %115, %cst_46 {dimension_numbers = #tpu.dot_dimension_numbers<[1], [0], [0], [1], [0, 0, 1, 1], [], []>} : vector<8x128xbf16>, vector<128x128xbf16>, vector<8x128xf32> -> vector<8x128xf32>
    %119 = vector.broadcast %117 : vector<1x128xf32> to vector<8x128xf32>
    %120 = arith.addf %118, %119 : vector<8x128xf32>
    %121 = math.tanh %120 : vector<8x128xf32>
    %c0_47 = arith.constant 0 : index
    %122 = arith.index_cast %113 : i32 to index
    %123 = vector.load %arg8[%c0_47, %122] : memref<8x896xf32, #tpu.memory_space<vmem>>, vector<8x128xf32>
    tpu.vector_store %arg8[%c0_47, %122], %121 {strides = array<i32>} : memref<8x896xf32, #tpu.memory_space<vmem>>, vector<8x128xf32>,
    %c4_i32 = arith.constant 4 : i32
    %c128_i32_48 = arith.constant 128 : i32
    %124 = arith.muli %c4_i32, %c128_i32_48 : i32
    %125 = tpu.assume_multiple %124, 128 : i32
    %c0_49 = arith.constant 0 : index
    %126 = arith.index_cast %125 : i32 to index
    %127 = vector.load %arg6[%c0_49, %126] : memref<128x896xbf16, #tpu.memory_space<vmem>>, vector<128x128xbf16>
    %c0_50 = arith.constant 0 : index
    %128 = arith.index_cast %125 : i32 to index
    %129 = vector.load %arg7[%c0_50, %128] : memref<1x896xf32, #tpu.memory_space<vmem>>, vector<1x128xf32>
    %cst_51 = arith.constant dense<0.000000e+00> : vector<8x128xf32>
    %130 = tpu.matmul %75, %127, %cst_51 {dimension_numbers = #tpu.dot_dimension_numbers<[1], [0], [0], [1], [0, 0, 1, 1], [], []>} : vector<8x128xbf16>, vector<128x128xbf16>, vector<8x128xf32> -> vector<8x128xf32>
    %131 = vector.broadcast %129 : vector<1x128xf32> to vector<8x128xf32>
    %132 = arith.addf %130, %131 : vector<8x128xf32>
    %133 = math.tanh %132 : vector<8x128xf32>
    %c0_52 = arith.constant 0 : index
    %134 = arith.index_cast %125 : i32 to index
    %135 = vector.load %arg8[%c0_52, %134] : memref<8x896xf32, #tpu.memory_space<vmem>>, vector<8x128xf32>
    tpu.vector_store %arg8[%c0_52, %134], %133 {strides = array<i32>} : memref<8x896xf32, #tpu.memory_space<vmem>>, vector<8x128xf32>,
    %c5_i32 = arith.constant 5 : i32
    %c128_i32_53 = arith.constant 128 : i32
    %136 = arith.muli %c5_i32, %c128_i32_53 : i32
    %137 = tpu.assume_multiple %136, 128 : i32
    %c0_54 = arith.constant 0 : index
    %138 = arith.index_cast %137 : i32 to index
    %139 = vector.load %arg6[%c0_54, %138] : memref<128x896xbf16, #tpu.memory_space<vmem>>, vector<128x128xbf16>
    %c0_55 = arith.constant 0 : index
    %140 = arith.index_cast %137 : i32 to index
    %141 = vector.load %arg7[%c0_55, %140] : memref<1x896xf32, #tpu.memory_space<vmem>>, vector<1x128xf32>
    %cst_56 = arith.constant dense<0.000000e+00> : vector<8x128xf32>
    %142 = tpu.matmul %75, %139, %cst_56 {dimension_numbers = #tpu.dot_dimension_numbers<[1], [0], [0], [1], [0, 0, 1, 1], [], []>} : vector<8x128xbf16>, vector<128x128xbf16>, vector<8x128xf32> -> vector<8x128xf32>
    %143 = vector.broadcast %141 : vector<1x128xf32> to vector<8x128xf32>
    %144 = arith.addf %142, %143 : vector<8x128xf32>
    %145 = math.tanh %144 : vector<8x128xf32>
    %c0_57 = arith.constant 0 : index
    %146 = arith.index_cast %137 : i32 to index
    %147 = vector.load %arg8[%c0_57, %146] : memref<8x896xf32, #tpu.memory_space<vmem>>, vector<8x128xf32>
    tpu.vector_store %arg8[%c0_57, %146], %145 {strides = array<i32>} : memref<8x896xf32, #tpu.memory_space<vmem>>, vector<8x128xf32>,
    %c6_i32 = arith.constant 6 : i32
    %c128_i32_58 = arith.constant 128 : i32
    %148 = arith.muli %c6_i32, %c128_i32_58 : i32
    %149 = tpu.assume_multiple %148, 128 : i32
    %c0_59 = arith.constant 0 : index
    %150 = arith.index_cast %149 : i32 to index
    %151 = vector.load %arg6[%c0_59, %150] : memref<128x896xbf16, #tpu.memory_space<vmem>>, vector<128x128xbf16>
    %c0_60 = arith.constant 0 : index
    %152 = arith.index_cast %149 : i32 to index
    %153 = vector.load %arg7[%c0_60, %152] : memref<1x896xf32, #tpu.memory_space<vmem>>, vector<1x128xf32>
    %cst_61 = arith.constant dense<0.000000e+00> : vector<8x128xf32>
    %154 = tpu.matmul %75, %151, %cst_61 {dimension_numbers = #tpu.dot_dimension_numbers<[1], [0], [0], [1], [0, 0, 1, 1], [], []>} : vector<8x128xbf16>, vector<128x128xbf16>, vector<8x128xf32> -> vector<8x128xf32>
    %155 = vector.broadcast %153 : vector<1x128xf32> to vector<8x128xf32>
    %156 = arith.addf %154, %155 : vector<8x128xf32>
    %157 = math.tanh %156 : vector<8x128xf32>
    %c0_62 = arith.constant 0 : index
    %158 = arith.index_cast %149 : i32 to index
    %159 = vector.load %arg8[%c0_62, %158] : memref<8x896xf32, #tpu.memory_space<vmem>>, vector<8x128xf32>
    tpu.vector_store %arg8[%c0_62, %158], %157 {strides = array<i32>} : memref<8x896xf32, #tpu.memory_space<vmem>>, vector<8x128xf32>,
    %c7_i32 = arith.constant 7 : i32
    return
  }
  func.func @transform_0(%arg0: i32) -> (i32, i32) {
    %c0_i32 = arith.constant 0 : i32
    %c0_i32_0 = arith.constant 0 : i32
    return %arg0, %c0_i32 : i32, i32
  }
  func.func @transform_1(%arg0: i32) -> (i32, i32) {
    %c0_i32 = arith.constant 0 : i32
    %c0_i32_0 = arith.constant 0 : i32
    %c0_i32_1 = arith.constant 0 : i32
    return %c0_i32, %c0_i32_0 : i32, i32
  }
  func.func @transform_2(%arg0: i32) -> (i32, i32) {
    %c0_i32 = arith.constant 0 : i32
    %c0_i32_0 = arith.constant 0 : i32
    %c0_i32_1 = arith.constant 0 : i32
    return %c0_i32, %c0_i32_0 : i32, i32
  }
  func.func @transform_3(%arg0: i32) -> (i32, i32) {
    %c0_i32 = arith.constant 0 : i32
    %c0_i32_0 = arith.constant 0 : i32
    %c0_i32_1 = arith.constant 0 : i32
    return %c0_i32, %c0_i32_0 : i32, i32
  }
  func.func @transform_4(%arg0: i32) -> (i32, i32) {
    %c0_i32 = arith.constant 0 : i32
    %c0_i32_0 = arith.constant 0 : i32
    %c0_i32_1 = arith.constant 0 : i32
    return %c0_i32, %c0_i32_0 : i32, i32
  }
  func.func @transform_5(%arg0: i32) -> (i32, i32) {
    %c0_i32 = arith.constant 0 : i32
    %c0_i32_0 = arith.constant 0 : i32
    %c0_i32_1 = arith.constant 0 : i32
    return %c0_i32, %c0_i32_0 : i32, i32
  }
  func.func @transform_6(%arg0: i32) -> (i32, i32) {
    %c0_i32 = arith.constant 0 : i32
    %c0_i32_0 = arith.constant 0 : i32
    %c0_i32_1 = arith.constant 0 : i32
    return %c0_i32, %c0_i32_0 : i32, i32
  }
  func.func @transform_7(%arg0: i32) -> (i32, i32) {
    %c0_i32 = arith.constant 0 : i32
    %c0_i32_0 = arith.constant 0 : i32
    return %arg0, %c0_i32 : i32, i32
  }
}

</mosaic_0001>

<bundles_post_ra>
// kernel: tpu_custom_call.1
= control target key start
LH: loop header
LB: loop body
LE: loop exit
PB: predicated region body
PF: predicated region fallthrough
CT: control target
= control target key end

     0   :  { %12 = vsyncpa [#allocation3], 0  ;;  %s1529_s0 = inlined_call_operand.hbm [shape: f32[8,32], index: 0, kind: input, shape index: {}]   ;;  %s1530_s1 = inlined_call_operand.hbm [shape: bf16[32,64], index: 1, kind: input, shape index: {}]   ;;  %s1531_s2 = inlined_call_operand.hbm [shape: f32[2,64], index: 2, kind: input, shape index: {}]   ;;  %s1532_s3 = inlined_call_operand.hbm [shape: bf16[64,128], index: 3, kind: input, shape index: {}]   ;;  %s1533_s4 = inlined_call_operand.vmem [shape: f32[2,128], index: 4, kind: input, shape index: {}]   ;;  %s1534_s5 = inlined_call_operand.hbm [shape: bf16[128,896], index: 5, kind: input, shape index: {}]   ;;  %s1535_s6 = inlined_call_operand.hbm [shape: f32[1,896], index: 6, kind: input, shape index: {}]   ;;  %s1536_s7 = inlined_call_operand.hbm [shape: f32[8,896], index: 7, kind: output, shape index: {}]  }
   0x1   :  { %13 = vsyncpa [#allocation6], 0 }
   0x2   :  { %14 = vsyncpa [#allocation9], 0 }
   0x3   :  { %15 = vsyncpa [#allocation12], 0  ;;  %s32_s26 = sshll.u32 %s1530_s1, 4  ;;  %s33_s26 = int_to_ptr.hbm [resolvable:$true] %s32_s26 }
   0x4   :  { %16 = vsyncpa [#allocation4], 0  ;;  %s1431_s27 = smov [#allocation5]   ;;  %s56_s8 = sshll.u32 %s1532_s3, 4  ;;  %s57_s8 = int_to_ptr.hbm [resolvable:$true] %s56_s8 }
   0x5   :  { %s34_s28 = sshll.u32 %s1431_s27, 4  ;;  %s1432_s9 = smov 64   ;;  %s35_s28 = int_to_ptr.vmem [resolvable:$true] %s34_s28 }
   0x6   :  { %s1433_s10 = smov 4   ;;  %s1434_s11 = smov [#allocation8]  }
   0x7   :  { %40 = dma.hbm_to_vmem [thread:$0]  %s33_s26, 256, %s35_s28, [#allocation6], %s1432_s9, %s1432_s9, %s1433_s10  }
   0x8   :  { %s58_s12 = sshll.u32 %s1434_s11, 4  ;;  %s22_s15 = sshll.u32 %s1529_s0, 4  ;;  %s59_s12 = int_to_ptr.vmem [resolvable:$true] %s58_s12  ;;  %s23_s15 = int_to_ptr.hbm [resolvable:$true] %s22_s15 }
   0x9   :  { %64 = dma.hbm_to_vmem [thread:$0]  %s57_s8, 512, %s59_s12, [#allocation9], %s1432_s9, %s1432_s9, %s1433_s10  }
   0xa   :  { %s46_s17 = sshll.u32 %s1531_s2, 4  ;;  %s1435_s18 = smov [#allocation2]   ;;  %s47_s17 = int_to_ptr.hbm [resolvable:$true] %s46_s17 }
   0xb   :  { %s24_s19 = sshll.u32 %s1435_s18, 4  ;;  %s1436_s3 = smov [#allocation7]   ;;  %s25_s19 = int_to_ptr.vmem [resolvable:$true] %s24_s19 }
   0xc   :  { %27 = dma.hbm_to_vmem [thread:$0]  %s23_s15, 128, %s25_s19, [#allocation3]  }
   0xd   :  { %s48_s20 = sshll.u32 %s1436_s3, 4  ;;  %s71_s23 = sshll.u32 %s1534_s5, 4  ;;  %s49_s20 = int_to_ptr.vmem [resolvable:$true] %s48_s20  ;;  %s72_s23 = int_to_ptr.hbm [resolvable:$true] %s71_s23 }
   0xe   :  { %51 = dma.hbm_to_vmem [thread:$0]  %s47_s17, 32, %s49_s20, [#allocation6]  }
   0xf   :  { %s1437_s0 = smov [#allocation10]   ;;  %s85_s2 = sshll.u32 %s1535_s6, 4  ;;  %s86_s2 = int_to_ptr.hbm [resolvable:$true] %s85_s2 }
  0x10   :  { %s73_s24 = sshll.u32 %s1437_s0, 4  ;;  %s1438_s27 = smov 448   ;;  %s74_s24 = int_to_ptr.vmem [resolvable:$true] %s73_s24 }
  0x11   :  { %s1439_s28 = smov 28   ;;  %s1440_s29 = smov [#allocation11]  }
  0x12   :  { %79 = dma.hbm_to_vmem [thread:$0]  %s72_s23, 7168, %s74_s24, [#allocation9], %s1438_s27, %s1438_s27, %s1439_s28  }
  0x13   :  { %s87_s30 = sshll.u32 %s1440_s29, 4  ;;  %s88_s30 = int_to_ptr.vmem [resolvable:$true] %s87_s30 }
  0x14   :  { %90 = dma.hbm_to_vmem [thread:$0]  %s86_s2, 112, %s88_s30, [#allocation12]  }
  0x15   :  { %1421 = dma.done.wait [#allocation3], 128  }
  0x16   :  { %1422 = vsyncadd [#allocation3], 4294967168 }
  0x17   :  { %1423 = dma.done.wait [#allocation6], 288  }
  0x18   :  { %1424 = vsyncadd [#allocation6], 4294967008 }
  0x19   :  { %1425 = dma.done.wait [#allocation9], 7680  }
  0x1a   :  { %1426 = vsyncadd [#allocation9], 4294959616 }
  0x1b   :  { %1427 = dma.done.wait [#allocation12], 112  }
  0x1c   :  { %1428 = vsyncadd [#allocation12], 4294967184  ;;  %v1156_v0 = vld [vmem:[#allocation5 + $0x8] sm:$0xff]  ;;  %v1155_v1 = vld [vmem:[#allocation5] sm:$0xff]  ;;  %vm134_vm0 = vcmask 261120   ;;  %vm151_vm1 = vcmask 523264  }
  0x1d   :  { %v116_v2 = vld [vmem:[#allocation2] sm:$0xff]  ;;  %144 = vmatpush.bf16.msra.mxu1 %v1156_v0  ;;  %v1160_v16 = vld [vmem:[#allocation8 + $0x18] sm:$0xff]  ;;  %v1159_v21 = vld [vmem:[#allocation8 + $0x10] sm:$0xff]  ;;  %s892_s13 = sshll.u32 %s1536_s7, 4  ;;  %s893_s13 = int_to_ptr.hbm [resolvable:$true] %s892_s13 }
  0x1e   :  { %v117_v3 = vpack.c.bf16 %v116_v2, %v116_v2  ;;  %v1158_v26 = vld [vmem:[#allocation8 + $0x8] sm:$0xff]  ;;  %v1157_v29 = vld [vmem:[#allocation8] sm:$0xff]  ;;  %v172_v36 = vld [vmem:[#allocation7] sm:$0x1] }
  0x1f   :  { %v173_v40 = vld [vmem:[#allocation7 + $0x1] sm:$0x1]  ;;  %v961_v50 = vld [vmem:[#allocation10 + $0x188] sm:$0xf]  ;;  %v1168_v51 = vld [vmem:[#allocation10 + $0x1a0] sm:$0xf0] }
  0x20   :  { %v993_v52 = vld [vmem:[#allocation10 + $0x18c] sm:$0xf]  ;;  %v962_v53 = vor.u32 %v1168_v51, %v961_v50  ;;  %v1176_v54 = vld [vmem:[#allocation10 + $0x1a4] sm:$0xf0]  ;;  %v1025_v55 = vld [vmem:[#allocation10 + $0x190] sm:$0xf] }
  0x21   :  { %145 = vmatpush.bf16.msra.mxu1 %v1155_v1  ;;  %v1184_v56 = vld [vmem:[#allocation10 + $0x1a8] sm:$0xf0]  ;;  %v994_v57 = vor.u32 %v1176_v54, %v993_v52  ;;  %v957_v59 = vld [vmem:[#allocation10 + $0x150] sm:$0xf]  ;;  %v989_v61 = vld [vmem:[#allocation10 + $0x154] sm:$0xf] }
  0x22   :  { %v1026_v58 = vor.u32 %v1184_v56, %v1025_v55  ;;  %354 = vmatpush.bf16.msra.mxu2 %v962_v53  ;;  %v1167_v60 = vld [vmem:[#allocation10 + $0x168] sm:$0xf0]  ;;  %v1175_v63 = vld [vmem:[#allocation10 + $0x16c] sm:$0xf0]  ;;  %v1021_v0 = vld [vmem:[#allocation10 + $0x158] sm:$0xf] }
  0x23   :  { %439 = vmatpush.bf16.msra.mxu3 %v994_v57  ;;  %v958_v62 = vor.u32 %v1167_v60, %v957_v59  ;;  %v1183_v1 = vld [vmem:[#allocation10 + $0x170] sm:$0xf0]  ;;  %v990_v2 = vor.u32 %v1175_v63, %v989_v61  ;;  %v937_v52 = vld [vmem:[#allocation10 + $0x38] sm:$0xf]  ;;  %v969_v55 = vld [vmem:[#allocation10 + $0x3c] sm:$0xf] }
  0x24   :  { %913 = vmatmul.msk.bf16.vlgmr.msra.gmra.mxu1 %vm134_vm0, %v117_v3  ;;  %525 = vmatpush.bf16.msra.mxu0 %v1026_v58  ;;  %v1022_v3 = vor.u32 %v1183_v1, %v1021_v0  ;;  %v1162_v53 = vld [vmem:[#allocation10 + $0x50] sm:$0xf0]  ;;  %v1170_v56 = vld [vmem:[#allocation10 + $0x54] sm:$0xf0]  ;;  %v1001_v57 = vld [vmem:[#allocation10 + $0x40] sm:$0xf] }
  0x25   :  { %235 = vmatpush.bf16.msrb.mxu1 %v1160_v16  ;;  %v938_v54 = vor.u32 %v1162_v53, %v937_v52  ;;  %v970_v60 = vor.u32 %v1170_v56, %v969_v55  ;;  %v1178_v61 = vld [vmem:[#allocation10 + $0x58] sm:$0xf0]  ;;  %v1189_v0 = vld [vmem:[#allocation10 + $0x104] sm:$0xf0]  ;;  %v1198_v53 = vld [vmem:[#allocation10 + $0x140] sm:$0xf0] }
  0x26   :  { %355 = vmatpush.bf16.msra.mxu2 %v958_v62  ;;  %v1045_v62 = vld [vmem:[#allocation10 + $0xec] sm:$0xf]  ;;  %v1002_v63 = vor.u32 %v1178_v61, %v1001_v57  ;;  %v1206_v56 = vld [vmem:[#allocation10 + $0x144] sm:$0xf0]  ;;  %v1145_v57 = vld [vmem:[#allocation10 + $0x130] sm:$0xf] }
  0x27   :  { %440 = vmatpush.bf16.msra.mxu3 %v990_v2 }
  0x28   :  { %526 = vmatpush.bf16.msra.mxu0 %v1022_v3  ;;  %v1046_v3 = vor.u32 %v1189_v0, %v1045_v62  ;;  %v1029_v62 = vld [vmem:[#allocation10 + $0xc] sm:$0xf]  ;;  %v1077_v0 = vld [vmem:[#allocation10 + $0xf0] sm:$0xf] }
  0x29   :  { %236 = vmatpush.bf16.msrb.mxu1 %v1159_v21 }
  0x2d   :  { %237 = vmatpush.bf16.msrb.mxu1 %v1158_v26  ;;  %v1164_v26 = vld [vmem:[#allocation10 + $0xc0] sm:$0xf0] }
  0x31   :  { %238 = vmatpush.bf16.msrb.mxu1 %v1157_v29  ;;  %v1172_v29 = vld [vmem:[#allocation10 + $0xc4] sm:$0xf0] }
  0xa1   :  { %v147_v4 = vpop.f32.mrf.mxu1 }
  0xa2   :  { %v152_v5 = vsel %vm151_vm1, %v147_v4, 0.0  ;;  %v160_v6 = vmul.f32 %v147_v4, %v147_v4 }
  0xa3   :  { %v153_v7 = vrot.slane %v152_v5, 4 }
  0xa4   :  { %v161_v8 = vsel %vm151_vm1, %v160_v6, 0.0  ;;  %v985_v6 = vld [vmem:[#allocation10 + $0x11c] sm:$0xf] }
  0xa5   :  { %v154_v9 = vadd.f32 %v153_v7, %v152_v5  ;;  %v162_v10 = vrot.slane %v161_v8, 4  ;;  %v1166_v5 = vld [vmem:[#allocation10 + $0x130] sm:$0xf0] }
  0xa7   :  { %v155_v11 = vrot.slane %v154_v9, 2  ;;  %v163_v12 = vadd.f32 %v162_v10, %v161_v8  ;;  %v1174_v8 = vld [vmem:[#allocation10 + $0x134] sm:$0xf0]  ;;  %v1182_v10 = vld [vmem:[#allocation10 + $0x138] sm:$0xf0] }
  0xa9   :  { %v156_v13 = vadd.f32 %v155_v11, %v154_v9  ;;  %v164_v14 = vrot.slane %v163_v12, 2  ;;  %v149_v15 = vpop.f32.mrf.mxu1  ;;  %v1017_v9 = vld [vmem:[#allocation10 + $0x120] sm:$0xf]  ;;  %v986_v11 = vor.u32 %v1174_v8, %v985_v6 }
  0xaa   :  { %v981_v15 = vld [vmem:[#allocation10 + $0xe4] sm:$0xf]  ;;  %v1169_v8 = vld [vmem:[#allocation10 + $0x1c] sm:$0xf0] }
  0xab   :  { %v157_v17 = vrot.slane %v156_v13, 1  ;;  %v165_v18 = vadd.f32 %v164_v14, %v163_v12  ;;  %v1018_v12 = vor.u32 %v1182_v10, %v1017_v9  ;;  %441 = vmatpush.bf16.msra.mxu3 %v986_v11  ;;  %v1165_v14 = vld [vmem:[#allocation10 + $0xf8] sm:$0xf0]  ;;  %v997_v9 = vld [vmem:[#allocation10 + $0x8] sm:$0xf] }
  0xad   :  { %v158_v19 = vadd.f32 %v157_v17, %v156_v13  ;;  %v166_v20 = vrot.slane %v165_v18, 1  ;;  %527 = vmatpush.bf16.msra.mxu0 %v1018_v12  ;;  %v949_v13 = vld [vmem:[#allocation10 + $0xe0] sm:$0xf] }
  0xae   :  { %v950_v16 = vor.u32 %v1165_v14, %v949_v13  ;;  %v1173_v17 = vld [vmem:[#allocation10 + $0xfc] sm:$0xf0]  ;;  %v1177_v13 = vld [vmem:[#allocation10 + $0x20] sm:$0xf0]  ;;  %v1041_v14 = vld [vmem:[#allocation10 + $0xb4] sm:$0xf] }
  0xaf   :  { %v159_v22 = vmul.f32 0.125, %v158_v19  ;;  %v167_v23 = vadd.f32 %v166_v20, %v165_v18  ;;  %v1013_v18 = vld [vmem:[#allocation10 + $0xe8] sm:$0xf]  ;;  %v1181_v19 = vld [vmem:[#allocation10 + $0x100] sm:$0xf0]  ;;  %v982_v20 = vor.u32 %v1173_v17, %v981_v15 }
  0xb0   :  { %v1014_v21 = vor.u32 %v1181_v19, %v1013_v18  ;;  %v1188_v17 = vld [vmem:[#allocation10 + $0xcc] sm:$0xf0]  ;;  %v1089_v18 = vld [vmem:[#allocation10 + $0x198] sm:$0xf]  ;;  %v1200_v19 = vld [vmem:[#allocation10 + $0x1b0] sm:$0xf0] }
  0xb1   :  { %v168_v24 = vmul.f32 0.125, %v167_v23  ;;  %v169_v25 = vmul.f32 %v159_v22, %v159_v22  ;;  %v1192_v23 = vld [vmem:[#allocation10 + $0x1ac] sm:$0xf0]  ;;  %442 = vmatpush.bf16.msra.mxu3 %v982_v20 }
  0xb2   :  { %528 = vmatpush.bf16.msra.mxu0 %v1014_v21 }
  0xb3   :  { %v170_v27 = vsub.f32 %v168_v24, %v169_v25  ;;  %v945_v25 = vld [vmem:[#allocation10 + $0xa8] sm:$0xf] }
  0xb5   :  { %v171_v28 = vmax.f32 %v170_v27, 0.0  ;;  %v977_v27 = vld [vmem:[#allocation10 + $0xac] sm:$0xf] }
  0xb7   :  { %v174_v30 = vadd.f32 0.8, %v171_v28  ;;  %v946_v28 = vor.u32 %v1164_v26, %v945_v25  ;;  %v1208_v25 = vld [vmem:[#allocation10 + $0x1b4] sm:$0xf0] }
  0xb9   :  { %1235 = vrsqrt.f32 %v174_v30  ;;  %vm181_vm3 = vweird.f32 %v174_v30 }
  0xbf   :  { %v1236_v31 = vpop.eup %1235 }
  0xc0   :  { %v176_v32 = vmul.f32 %v1236_v31, %v174_v30  ;;  %vm182_vm2 = vweird.f32 %v1236_v31  ;;  %v1009_v30 = vld [vmem:[#allocation10 + $0xb0] sm:$0xf] }
  0xc1   :  { %vm183_vm4 = vmor %vm181_vm3, %vm182_vm2 }
  0xc2   :  { %v177_v33 = vmul.f32 %v1236_v31, %v176_v32  ;;  %v978_v32 = vor.u32 %v1172_v29, %v977_v27  ;;  %v1153_v27 = vld [vmem:[#allocation10 + $0x1a0] sm:$0xf]  ;;  %v1037_v29 = vld [vmem:[#allocation10 + $0x7c] sm:$0xf] }
  0xc4   :  { %v178_v34 = vmul.f32 0.5, %v177_v33  ;;  %443 = vmatpush.bf16.msra.mxu3 %v978_v32 }
  0xc6   :  { %v179_v35 = vsub.f32 1.5, %v178_v34  ;;  %v1053_v34 = vld [vmem:[#allocation10 + $0x15c] sm:$0xf] }
  0xc8   :  { %v180_v37 = vmul.f32 %v1236_v31, %v179_v35  ;;  %v1191_v35 = vld [vmem:[#allocation10 + $0x174] sm:$0xf0] }
  0xca   :  { %v184_v38 = vsel %vm183_vm4, %v1236_v31, %v180_v37  ;;  %v1180_v31 = vld [vmem:[#allocation10 + $0xc8] sm:$0xf0]  ;;  %v941_v37 = vld [vmem:[#allocation10 + $0x70] sm:$0xf] }
  0xcb   :  { %v185_v39 = vmul.f32 %v184_v38, %v172_v36  ;;  %v1010_v33 = vor.u32 %v1180_v31, %v1009_v30  ;;  %v1054_v36 = vor.u32 %v1191_v35, %v1053_v34  ;;  %v1163_v38 = vld [vmem:[#allocation10 + $0x88] sm:$0xf0]  ;;  %v1085_v34 = vld [vmem:[#allocation10 + $0x160] sm:$0xf] }
  0xcd   :  { %v186_v41 = vmul.f32 %v185_v39, %v159_v22  ;;  %v188_v42 = vperm.slane %v185_v39, 0  ;;  %v1057_v22 = vld [vmem:[#allocation10 + $0x194] sm:$0xf]  ;;  %529 = vmatpush.bf16.msra.mxu0 %v1010_v33  ;;  %v1187_v33 = vld [vmem:[#allocation10 + $0x94] sm:$0xf0] }
  0xce   :  { %v1058_v24 = vor.u32 %v1192_v23, %v1057_v22  ;;  %v973_v39 = vld [vmem:[#allocation10 + $0x74] sm:$0xf]  ;;  %v1042_v22 = vor.u32 %v1188_v17, %v1041_v14  ;;  %v1090_v23 = vor.u32 %v1200_v19, %v1089_v18  ;;  %v1038_v35 = vor.u32 %v1187_v33, %v1037_v29  ;;  %v1105_v14 = vld [vmem:[#allocation10 + $0xbc] sm:$0xf]  ;;  %v1137_v17 = vld [vmem:[#allocation10 + $0xc0] sm:$0xf] }
  0xcf   :  { %v187_v43 = vsub.f32 %v173_v40, %v186_v41  ;;  %v189_v44 = vmul.f32 %v188_v42, %v147_v4  ;;  %v953_v4 = vld [vmem:[#allocation10 + $0x118] sm:$0xf]  ;;  %v942_v40 = vor.u32 %v1163_v38, %v941_v37  ;;  %v1171_v41 = vld [vmem:[#allocation10 + $0x8c] sm:$0xf0]  ;;  %v1117_v37 = vld [vmem:[#allocation10 + $0x164] sm:$0xf] }
  0xd0   :  { %v954_v7 = vor.u32 %v1166_v5, %v953_v4  ;;  %611 = vmatpush.bf16.msra.mxu1 %v1058_v24  ;;  %v1005_v42 = vld [vmem:[#allocation10 + $0x78] sm:$0xf]  ;;  %v933_v4 = vld [vmem:[#allocation10] sm:$0xf]  ;;  %v1161_v5 = vld [vmem:[#allocation10 + $0x18] sm:$0xf0] }
  0xd1   :  { %v190_v45 = vperm.slane %v187_v43, 0  ;;  %v1179_v43 = vld [vmem:[#allocation10 + $0x90] sm:$0xf0]  ;;  %v934_v6 = vor.u32 %v1161_v5, %v933_v4  ;;  %v1121_v24 = vld [vmem:[#allocation10 + $0x19c] sm:$0xf] }
  0xd2   :  { %356 = vmatpush.bf16.msra.mxu2 %v954_v7  ;;  %v965_v7 = vld [vmem:[#allocation10 + $0x4] sm:$0xf]  ;;  %v1122_v26 = vor.u32 %v1208_v25, %v1121_v24  ;;  %v1207_v38 = vld [vmem:[#allocation10 + $0x17c] sm:$0xf0]  ;;  %v1109_v4 = vld [vmem:[#allocation10 + $0xf4] sm:$0xf] }
  0xd3   :  { %v191_v46 = vadd.f32 %v190_v45, %v189_v44  ;;  %v974_v44 = vor.u32 %v1171_v41, %v973_v39  ;;  %v1006_v45 = vor.u32 %v1179_v43, %v1005_v42  ;;  %v966_v12 = vor.u32 %v1169_v8, %v965_v7  ;;  %v1149_v43 = vld [vmem:[#allocation10 + $0x168] sm:$0xf]  ;;  %v1141_v7 = vld [vmem:[#allocation10 + $0xf8] sm:$0xf]  ;;  %v1213_v8 = vld [vmem:[#allocation10 + $0x110] sm:$0xf0] }
  0xd4   :  { %612 = vmatpush.bf16.msra.mxu1 %v1054_v36  ;;  %v1199_v36 = vld [vmem:[#allocation10 + $0x178] sm:$0xf0]  ;;  %v1118_v42 = vor.u32 %v1207_v38, %v1117_v37  ;;  %v1203_v24 = vld [vmem:[#allocation10 + $0x9c] sm:$0xf0]  ;;  %v1133_v25 = vld [vmem:[#allocation10 + $0x88] sm:$0xf] }
  0xd5   :  { %v193_v47 = vmul.f32 0.2, %v191_v46  ;;  %vm192_vm5 = vcmp.ge.f32.partialorder %v191_v46, 0.0  ;;  %444 = vmatpush.bf16.msra.mxu3 %v974_v44  ;;  %530 = vmatpush.bf16.msra.mxu0 %v1006_v45  ;;  %v1086_v41 = vor.u32 %v1199_v36, %v1085_v34  ;;  %v1215_v44 = vld [vmem:[#allocation10 + $0x180] sm:$0xf0] }
  0xd6   :  { %357 = vmatpush.bf16.msra.mxu2 %v950_v16  ;;  %v998_v16 = vor.u32 %v1177_v13, %v997_v9  ;;  %v1150_v45 = vor.u32 %v1215_v44, %v1149_v43  ;;  %v1196_v13 = vld [vmem:[#allocation10 + $0xd0] sm:$0xf0]  ;;  %v1212_v18 = vld [vmem:[#allocation10 + $0xd8] sm:$0xf0]  ;;  %v1065_v29 = vld [vmem:[#allocation10 + $0x48] sm:$0xf] }
  0xd7   :  { %v194_v48 = vsel %vm192_vm5, %v191_v46, %v193_v47  ;;  %v1049_v46 = vld [vmem:[#allocation10 + $0x124] sm:$0xf]  ;;  %v1190_v47 = vld [vmem:[#allocation10 + $0x13c] sm:$0xf0]  ;;  %v1097_v33 = vld [vmem:[#allocation10 + $0x4c] sm:$0xf] }
  0xd8   :  { %v195_v49 = vpack.c.bf16 %v194_v48, %v194_v48  ;;  %v1202_v34 = vld [vmem:[#allocation10 + $0x64] sm:$0xf0]  ;;  %v1129_v36 = vld [vmem:[#allocation10 + $0x50] sm:$0xf]  ;;  %v1210_v37 = vld [vmem:[#allocation10 + $0x68] sm:$0xf0] }
  0xd9   :  { %445 = vmatpush.bf16.msra.mxu3 %v970_v60  ;;  %531 = vmatpush.bf16.msra.mxu0 %v1002_v63  ;;  %v1185_v63 = vld [vmem:[#allocation10 + $0x24] sm:$0xf0]  ;;  %v1193_v43 = vld [vmem:[#allocation10 + $0x28] sm:$0xf0]  ;;  %v1130_v44 = vor.u32 %v1210_v37, %v1129_v36 }
  0xda   :  { %930 = vmatmul.msk.bf16.vlgmr.msrb.gmra.mxu1 %vm151_vm1, %v195_v49  ;;  %358 = vmatpush.bf16.msra.mxu2 %v946_v28  ;;  %v1050_v49 = vor.u32 %v1190_v47, %v1049_v46  ;;  %v1216_v28 = vld [vmem:[#allocation10 + $0x1b8] sm:$0xf0]  ;;  %v1033_v46 = vld [vmem:[#allocation10 + $0x44] sm:$0xf]  ;;  %v1186_v47 = vld [vmem:[#allocation10 + $0x5c] sm:$0xf0] }
  0xdb   :  { %v1154_v32 = vor.u32 %v1216_v28, %v1153_v27  ;;  %v1034_v52 = vor.u32 %v1186_v47, %v1033_v46  ;;  %v1201_v46 = vld [vmem:[#allocation10 + $0x2c] sm:$0xf0] }
  0xdc   :  { %613 = vmatpush.bf16.msra.mxu1 %v1050_v49  ;;  %v1081_v49 = vld [vmem:[#allocation10 + $0x128] sm:$0xf] }
  0xdd   :  { %446 = vmatpush.bf16.msra.mxu3 %v966_v12  ;;  %532 = vmatpush.bf16.msra.mxu0 %v998_v16  ;;  %v1082_v55 = vor.u32 %v1198_v53, %v1081_v49  ;;  %v1073_v12 = vld [vmem:[#allocation10 + $0xb8] sm:$0xf] }
  0xde   :  { %359 = vmatpush.bf16.msra.mxu2 %v942_v40  ;;  %v1204_v16 = vld [vmem:[#allocation10 + $0xd4] sm:$0xf0] }
  0xdf   :  { %v1106_v19 = vor.u32 %v1204_v16, %v1105_v14  ;;  %v1125_v49 = vld [vmem:[#allocation10 + $0x18] sm:$0xf] }
  0xe0   :  { %614 = vmatpush.bf16.msra.mxu1 %v1046_v3  ;;  %v1197_v3 = vld [vmem:[#allocation10 + $0x108] sm:$0xf0] }
  0xe1   :  { %783 = vmatpush.bf16.msrb.mxu3 %v1122_v26  ;;  %869 = vmatpush.bf16.msrb.mxu0 %v1154_v32  ;;  %v1078_v5 = vor.u32 %v1197_v3, %v1077_v0  ;;  %v1211_v26 = vld [vmem:[#allocation10 + $0xa0] sm:$0xf0] }
  0xe2   :  { %360 = vmatpush.bf16.msra.mxu2 %v938_v54  ;;  %v1113_v54 = vld [vmem:[#allocation10 + $0x12c] sm:$0xf]  ;;  %v1134_v32 = vor.u32 %v1211_v26, %v1133_v25  ;;  %v1233_v26 = vld [vmem:[#allocation11 + $0x4] ss:$0 sm:$0xff] }
  0xe3   :  { %v1114_v60 = vor.u32 %v1206_v56, %v1113_v54 }
  0xe4   :  { %615 = vmatpush.bf16.msra.mxu1 %v1042_v22  ;;  %v1195_v22 = vld [vmem:[#allocation10 + $0x98] sm:$0xf0] }
  0xe5   :  { %784 = vmatpush.bf16.msrb.mxu3 %v1118_v42  ;;  %870 = vmatpush.bf16.msrb.mxu0 %v1150_v45  ;;  %v1061_v42 = vld [vmem:[#allocation10 + $0x10] sm:$0xf]  ;;  %v1093_v45 = vld [vmem:[#allocation10 + $0x14] sm:$0xf] }
  0xe6   :  { %361 = vmatpush.bf16.msra.mxu2 %v934_v6  ;;  %v1205_v6 = vld [vmem:[#allocation10 + $0x10c] sm:$0xf0]  ;;  %v1094_v53 = vor.u32 %v1201_v46, %v1093_v45 }
  0xe8   :  { %616 = vmatpush.bf16.msra.mxu1 %v1038_v35 }
  0xe9   :  { %785 = vmatpush.bf16.msrb.mxu3 %v1114_v60 }
  0xea   :  { %697 = vmatpush.bf16.msrb.mxu2 %v1090_v23  ;;  %v1101_v23 = vld [vmem:[#allocation10 + $0x84] sm:$0xf] }
  0xeb   :  { %v1102_v28 = vor.u32 %v1203_v24, %v1101_v23 }
  0xec   :  { %617 = vmatpush.bf16.msra.mxu1 %v1034_v52 }
  0xee   :  { %698 = vmatpush.bf16.msrb.mxu2 %v1086_v41  ;;  %v1098_v41 = vor.u32 %v1202_v34, %v1097_v33 }
  0xf2   :  { %699 = vmatpush.bf16.msrb.mxu2 %v1082_v55  ;;  %v262_v55 = vld [vmem:[%s1533_s4] sm:$0x1] }
  0xf6   :  { %700 = vmatpush.bf16.msrb.mxu2 %v1078_v5  ;;  %v1228_v5 = vld [vmem:[#allocation11 + $0x2] ss:$0 sm:$0xff] }
 0x157   :  { %v1503_v48 = vpop.f32.mrf.mxu1 }
 0x158   :  { %v244_v50 = vrot.slane %v1503_v48, 4  ;;  %v251_v51 = vmul.f32 %v1503_v48, %v1503_v48 }
 0x15a   :  { %v245_v58 = vadd.f32 %v244_v50, %v1503_v48  ;;  %v252_v59 = vrot.slane %v251_v51, 4 }
 0x15c   :  { %v246_v1 = vrot.slane %v245_v58, 2  ;;  %v253_v2 = vadd.f32 %v252_v59, %v251_v51 }
 0x15e   :  { %v247_v10 = vadd.f32 %v246_v1, %v245_v58  ;;  %v254_v11 = vrot.slane %v253_v2, 2  ;;  %v1214_v58 = vld [vmem:[#allocation10 + $0x148] sm:$0xf0] }
 0x15f   :  { %v242_v15 = vpop.f32.mrf.mxu1  ;;  %v1146_v61 = vor.u32 %v1214_v58, %v1145_v57 }
 0x160   :  { %v248_v20 = vrot.slane %v247_v10, 1  ;;  %v255_v21 = vadd.f32 %v254_v11, %v253_v2  ;;  %v1030_v2 = vor.u32 %v1185_v63, %v1029_v62  ;;  %v1142_v11 = vor.u32 %v1213_v8, %v1141_v7 }
 0x161   :  { %871 = vmatpush.bf16.msrb.mxu0 %v1146_v61  ;;  %v1074_v15 = vor.u32 %v1196_v13, %v1073_v12 }
 0x162   :  { %v249_v30 = vadd.f32 %v248_v20, %v247_v10  ;;  %v256_v31 = vrot.slane %v255_v21, 1  ;;  %v1110_v10 = vor.u32 %v1205_v6, %v1109_v4  ;;  %618 = vmatpush.bf16.msra.mxu1 %v1030_v2  ;;  %v1138_v20 = vor.u32 %v1212_v18, %v1137_v17  ;;  %v1229_v6 = vld [vmem:[#allocation11 + $0x3] ss:$0 sm:$0xff] }
 0x163   :  { %701 = vmatpush.bf16.msrb.mxu2 %v1074_v15 }
 0x164   :  { %v1509_v39 = vmul.f32 0.125, %v249_v30  ;;  %v257_v40 = vadd.f32 %v256_v31, %v255_v21  ;;  %786 = vmatpush.bf16.msrb.mxu3 %v1110_v10  ;;  %v1069_v21 = vld [vmem:[#allocation10 + $0x80] sm:$0xf]  ;;  %v1194_v30 = vld [vmem:[#allocation10 + $0x60] sm:$0xf0] }
 0x165   :  { %872 = vmatpush.bf16.msrb.mxu0 %v1142_v11  ;;  %v1070_v27 = vor.u32 %v1195_v22, %v1069_v21  ;;  %v1066_v38 = vor.u32 %v1194_v30, %v1065_v29  ;;  %v1231_v10 = vld [vmem:[#allocation11 + $0x1] ss:$0 sm:$0xff]  ;;  %v1232_v21 = vld [vmem:[#allocation11 + $0x6] ss:$0 sm:$0xff] }
 0x166   :  { %v258_v50 = vmul.f32 0.125, %v257_v40  ;;  %v259_v51 = vmul.f32 %v1509_v39, %v1509_v39 }
 0x167   :  { %702 = vmatpush.bf16.msrb.mxu2 %v1070_v27  ;;  %v1234_v27 = vld [vmem:[#allocation11 + $0x5] ss:$0 sm:$0xff] }
 0x168   :  { %v260_v59 = vsub.f32 %v258_v50, %v259_v51  ;;  %787 = vmatpush.bf16.msrb.mxu3 %v1106_v19  ;;  %v1209_v50 = vld [vmem:[#allocation10 + $0x30] sm:$0xf0]  ;;  %v1062_v51 = vor.u32 %v1193_v43, %v1061_v42 }
 0x169   :  { %873 = vmatpush.bf16.msrb.mxu0 %v1138_v20  ;;  %v1126_v54 = vor.u32 %v1209_v50, %v1125_v49 }
 0x16a   :  { %v261_v1 = vmax.f32 %v260_v59, 0.0  ;;  %v263_v59 = vld [vmem:[%s1533_s4 + $0x1] sm:$0x1]  ;;  %s1441_s4 = smov [#allocation13]  }
 0x16b   :  { %703 = vmatpush.bf16.msrb.mxu2 %v1066_v38  ;;  %s890_s10 = sshll.u32 %s1441_s4, 4  ;;  %s891_s10 = int_to_ptr.vmem [resolvable:$true] %s890_s10 }
 0x16c   :  { %v1513_v9 = vadd.f32 0.8, %v261_v1  ;;  %788 = vmatpush.bf16.msrb.mxu3 %v1102_v28 }
 0x16d   :  { %874 = vmatpush.bf16.msrb.mxu0 %v1134_v32 }
 0x16e   :  { %1237 = vrsqrt.f32 %v1513_v9  ;;  %vm271_vm7 = vweird.f32 %v1513_v9 }
 0x16f   :  { %704 = vmatpush.bf16.msrb.mxu2 %v1062_v51 }
 0x170   :  { %789 = vmatpush.bf16.msrb.mxu3 %v1098_v41 }
 0x171   :  { %875 = vmatpush.bf16.msrb.mxu0 %v1130_v44 }
 0x174   :  { %v1238_v31 = vpop.eup %1237  ;;  %790 = vmatpush.bf16.msrb.mxu3 %v1094_v53 }
 0x175   :  { %v266_v35 = vmul.f32 %v1238_v31, %v1513_v9  ;;  %vm272_vm6 = vweird.f32 %v1238_v31  ;;  %876 = vmatpush.bf16.msrb.mxu0 %v1126_v54 }
 0x176   :  { %vm273_vm8 = vmor %vm271_vm7, %vm272_vm6 }
 0x177   :  { %v267_v40 = vmul.f32 %v1238_v31, %v266_v35 }
 0x179   :  { %v268_v47 = vmul.f32 0.5, %v267_v40 }
 0x17b   :  { %v269_v52 = vsub.f32 1.5, %v268_v47 }
 0x17d   :  { %v270_v56 = vmul.f32 %v1238_v31, %v269_v52 }
 0x17f   :  { %v274_v57 = vsel %vm273_vm8, %v1238_v31, %v270_v56 }
 0x180   :  { %v275_v58 = vmul.f32 %v274_v57, %v262_v55 }
 0x182   :  { %v276_v60 = vmul.f32 %v275_v58, %v1509_v39  ;;  %v278_v61 = vperm.slane %v275_v58, 0 }
 0x184   :  { %v277_v62 = vsub.f32 %v263_v59, %v276_v60  ;;  %v279_v63 = vmul.f32 %v278_v61, %v1503_v48  ;;  %v1230_v48 = vld [vmem:[#allocation11] ss:$0 sm:$0xff] }
 0x186   :  { %v280_v0 = vperm.slane %v277_v62, 0 }
 0x188   :  { %v281_v1 = vadd.f32 %v280_v0, %v279_v63 }
 0x18a   :  { %vm282_vm9 = vcmp.ge.f32.partialorder %v281_v1, 0.0  ;;  %v283_v2 = vmul.f32 0.2, %v281_v1 }
 0x18c   :  { %v284_v3 = vsel %vm282_vm9, %v281_v1, %v283_v2 }
 0x18d   :  { %v285_v4 = vpack.c.bf16 %v284_v3, %v284_v3 }
 0x18f   :  { %362 = vmatmul.bf16.vlgmr.msra.gmra.mxu2 %v285_v4  ;;  %447 = vmatmul.bf16.vlgmr.msra.gmra.mxu3 %v285_v4 }
 0x190   :  { %533 = vmatmul.bf16.vlgmr.msra.gmra.mxu0 %v285_v4  ;;  %619 = vmatmul.bf16.vlgmr.msra.gmra.mxu1 %v285_v4 }
 0x19f   :  { %705 = vmatmul.bf16.vlgmr.msrb.gmra.mxu2 %v285_v4  ;;  %791 = vmatmul.bf16.vlgmr.msrb.gmra.mxu3 %v285_v4 }
 0x1a0   :  { %877 = vmatmul.bf16.vlgmr.msrb.gmra.mxu0 %v285_v4 }
 0x20d   :  { %v534_v39 = vpop.f32.mrf.mxu0  ;;  %v620_v7 = vpop.f32.mrf.mxu1 }
 0x20e   :  { %v535_v8 = vadd.f32 %v1228_v5, %v534_v39  ;;  %v621_v9 = vadd.f32 %v1229_v6, %v620_v7 }
 0x210   :  { %1239 = vtanh.f32 %v535_v8 }
 0x211   :  { %1241 = vtanh.f32 %v621_v9 }
 0x212   :  { %v363_v11 = vpop.f32.mrf.mxu2  ;;  %v448_v12 = vpop.f32.mrf.mxu3 }
 0x213   :  { %v364_v13 = vadd.f32 %v1230_v48, %v363_v11  ;;  %v449_v14 = vadd.f32 %v1231_v10, %v448_v12 }
 0x215   :  { %1243 = vtanh.f32 %v364_v13  ;;  %v536_v15 = vpop.f32.mrf.mxu0  ;;  %v622_v16 = vpop.f32.mrf.mxu1 }
 0x216   :  { %v1240_v17 = vpop.eup %1239  ;;  %1245 = vtanh.f32 %v449_v14 }
 0x217   :  { %v1242_v18 = vpop.eup %1241  ;;  %540 = vst [vmem:[#allocation13 + $0x10] sm:$0xff] %v1240_v17 }
 0x218   :  { %626 = vst [vmem:[#allocation13 + $0x18] sm:$0xff] %v1242_v18 }
 0x21a   :  { %v365_v19 = vpop.f32.mrf.mxu2  ;;  %v450_v20 = vpop.f32.mrf.mxu3 }
 0x21b   :  { %v1244_v22 = vpop.eup %1243 }
 0x21c   :  { %v1246_v23 = vpop.eup %1245  ;;  %368 = vst [vmem:[#allocation13] sm:$0xff] %v1244_v22 }
 0x21d   :  { %454 = vst [vmem:[#allocation13 + $0x8] sm:$0xff] %v1246_v23  ;;  %v878_v24 = vpop.f32.mrf.mxu0 }
 0x21e   :  { %v879_v25 = vadd.f32 %v1232_v21, %v878_v24 }
 0x220   :  { %1247 = vtanh.f32 %v879_v25 }
 0x222   :  { %v706_v28 = vpop.f32.mrf.mxu2  ;;  %v792_v29 = vpop.f32.mrf.mxu3 }
 0x223   :  { %v707_v30 = vadd.f32 %v1233_v26, %v706_v28  ;;  %v793_v31 = vadd.f32 %v1234_v27, %v792_v29 }
 0x225   :  { %1249 = vtanh.f32 %v707_v30  ;;  %v880_v32 = vpop.f32.mrf.mxu0 }
 0x226   :  { %v1248_v33 = vpop.eup %1247  ;;  %1251 = vtanh.f32 %v793_v31 }
 0x227   :  { %884 = vst [vmem:[#allocation13 + $0x30] sm:$0xff] %v1248_v33 }
 0x22a   :  { %v708_v34 = vpop.f32.mrf.mxu2  ;;  %v794_v35 = vpop.f32.mrf.mxu3 }
 0x22b   :  { %v1250_v36 = vpop.eup %1249 }
 0x22c   :  { %v1252_v37 = vpop.eup %1251  ;;  %712 = vst [vmem:[#allocation13 + $0x20] sm:$0xff] %v1250_v36 }
 0x22d   :  { %798 = vst [vmem:[#allocation13 + $0x28] sm:$0xff] %v1252_v37 }
 0x22e   :  { %895 = dma.vmem_to_hbm [thread:$0]  %s891_s10, 896, %s893_s13, [#allocation4]  }
 0x22f   :  { %1429 = dma.done.wait [#allocation4], 896  }
 0x230   :  { %1430 = vsyncadd [#allocation4], 4294966400 }
 0x231   :  { %900 = vsyncpa [#allocation3], 1 }
 0x232   :  { %901 = vsyncpa [#allocation6], 1 }
 0x233   :  { %902 = vsyncpa [#allocation9], 1 }
 0x234   :  { %903 = vsyncpa [#allocation12], 1 }
 0x235   :  { %904 = vsyncpa [#allocation4], 1 }

</bundles_post_ra>
